<compile_context>
chip_gen: v5e
topology: v5e:2x2
jax: 0.10.0
libtpu: 0.0.40
codegen_flags: <defaults>
</compile_context>

<pallas_src>
import math
import functools

import jax
import jax.numpy as jnp
import numpy as np
from jax.experimental import pallas as pl
from jax.experimental.pallas import tpu as pltpu


# Masking value for invalid (ragged-edge) class columns: exp(s * _PAD_VALUE)
# underflows cleanly to 0.0 in float32 (no inf/nan), so they drop out for free.
_PAD_VALUE = -1e4


def _round_up(x, mult):
    return ((x + mult - 1) // mult) * mult


def _angular_loss_kernel(x_ref, lab_ref, o_ref, tgt_acc, sum_acc,
                         *, loss_type, s, m, eps, n_rows, n_cols, lane_path):
    """One (TN, TC) tile. Grid = (row_tiles, class_tiles); class axis reduced."""
    i = pl.program_id(0)
    k = pl.program_id(1)
    nk = pl.num_programs(1)

    x = x_ref[...].astype(jnp.float32)      # (tn, tc) (bf16 inputs upcast here)
    lab = lab_ref[...]                      # (tn, 1) int32
    tn, tc = x.shape

    # Local (per-tile) column index; localize the label instead of globalizing
    # the iota (saves a full-tile integer add per element).
    col_local = jax.lax.broadcasted_iota(jnp.int32, (tn, tc), 1)
    lab_local = lab - k * tc                # (tn, 1) scalar-broadcast subtract
    onehot = col_local == lab_local

    # Ragged class edge: OOB lanes of the edge block hold undefined VMEM data.
    # Mask before any arithmetic; select does not propagate NaN/Inf garbage.
    if n_cols % tc != 0:
        col_valid = col_local < (n_cols - k * tc)   # scalar RHS, no per-elem add
        x = jnp.where(col_valid, x, _PAD_VALUE)

    # One exp pass over the tile (EUP). Excluded-sum kept masked (not
    # total-minus-target) to avoid catastrophic cancellation when the target
    # exp dominates the row.
    e = jnp.exp(s * x)

    if lane_path:
        # tc % 128 == 0: accumulate per-lane partials with plain VPU adds over
        # static 128-wide lane slices (no relayout, no per-step cross-lane XLU
        # reduce, no narrow masked scratch stores). Single XLU reduce in finalize.
        @pl.when(k == 0)
        def _():
            tgt_acc[...] = jnp.zeros_like(tgt_acc)
            sum_acc[...] = jnp.zeros_like(sum_acc)

        tgt_p = None
        sum_p = None
        for j in range(tc // 128):
            sl = slice(j * 128, (j + 1) * 128)
            oh = onehot[:, sl]
            t = jnp.where(oh, x[:, sl], 0.0)
            se = jnp.where(oh, 0.0, e[:, sl])
            tgt_p = t if tgt_p is None else tgt_p + t
            sum_p = se if sum_p is None else sum_p + se
        tgt_acc[...] += tgt_p
        sum_acc[...] += sum_p

    @pl.when(k == nk - 1)
    def _():
        if lane_path:
            target = jnp.sum(tgt_acc[...], axis=1, keepdims=True)   # (tn, 1)
            excl = jnp.sum(sum_acc[...], axis=1, keepdims=True)     # (tn, 1)
        else:
            # Single class tile with tc == n_cols (possibly not lane-aligned):
            # reduce directly, accumulators unused.
            target = jnp.sum(jnp.where(onehot, x, 0.0), axis=1, keepdims=True)
            excl = jnp.sum(jnp.where(onehot, 0.0, e), axis=1, keepdims=True)

        if loss_type == 'cosface':
            numerator = s * (target - m)
        elif loss_type == 'arcface':
            t = jnp.clip(target, -1.0 + eps, 1.0 - eps)
            # cos(acos(t) + m) = t*cos(m) - sqrt(1 - t^2)*sin(m)  (exact identity;
            # avoids acos, which has no reliable Mosaic lowering).
            numerator = s * (t * math.cos(m) - jnp.sqrt(1.0 - t * t) * math.sin(m))
        else:
            # TODO(synk): sphereface needs cos(m*acos(t)) with non-integer m; no
            # closed form without acos, which is not reliably lowerable in Mosaic.
            raise NotImplementedError("sphereface not implemented in the Pallas kernel")

        denominator = jnp.exp(numerator) + excl
        L = numerator - jnp.log(denominator)                        # (tn, 1)

        # Ragged row edge: validity from the row index (NOT from label contents,
        # which are undefined in edge blocks); use select so NaN/Inf garbage from
        # undefined rows cannot leak through.
        if n_rows % tn != 0:
            row_local = jax.lax.broadcasted_iota(jnp.int32, (tn, 1), 0)
            L = jnp.where(row_local < (n_rows - i * tn), L, 0.0)

        # Per-row-tile partial sum written as one small lane-dense (1,8,128)
        # block -> minimal HBM writeback; wrapper sums grid_rows scalars.
        val = jnp.sum(L, axis=0, keepdims=True)                     # (1, 1)
        o_ref[...] = jnp.broadcast_to(val, o_ref.shape)


def angular_penalty_sm_loss(x, labels, out_features, loss_type='arcface',
                            eps=1e-5, s=None, m=None,
                            block_rows=256, block_cols=4096):
    """Forward pass of AngularPenaltySMLoss. x: (N, out_features), labels: (N,).

    Precondition (as in the torch module's asserts): 0 <= labels < out_features.
    x may be float32 or bfloat16 (bf16 halves HBM traffic; all math stays f32).
    """
    loss_type = loss_type.lower()
    assert loss_type in ('arcface', 'sphereface', 'cosface')
    if loss_type == 'arcface':
        s = 64.0 if s is None else s
        m = 0.5 if m is None else m
    elif loss_type == 'sphereface':
        s = 64.0 if s is None else s
        m = 1.35 if m is None else m
    elif loss_type == 'cosface':
        s = 30.0 if s is None else s
        m = 0.4 if m is None else m
    if loss_type == 'sphereface':
        raise NotImplementedError("sphereface not implemented in the Pallas kernel")

    n, c = x.shape
    assert c == out_features
    assert labels.shape == (n,)

    itemsize = jnp.dtype(x.dtype).itemsize
    sub = {4: 8, 2: 16, 1: 32}.get(itemsize, 8)   # sublane quantum per dtype

    # --- Row tiling: sublane aligned; guarantee >=2 row tiles when possible so
    # the "parallel" axis shards across both TensorCores on v7x.
    block_rows = _round_up(max(int(block_rows), sub), sub)
    tn = min(block_rows, _round_up(n, sub))
    if n > sub and -(-n // tn) < 2:
        tn = max(sub, _round_up(-(-n // 2), sub))

    # --- Class tiling: single class tile (tc == C -> no reduction loop, fully
    # contiguous DMA) when it fits the per-tile budget and the caller's
    # block_cols; otherwise lane-aligned tiles of at most block_cols.
    block_cols = _round_up(max(int(block_cols), 128), 128)
    tile_budget = 12 * 1024 * 1024          # per x tile (Pallas double-buffers it)
    if (_round_up(c, 128) <= block_cols
            and tn * _round_up(c, 128) * itemsize <= tile_budget):
        tc = c
    else:
        max_tc = max(128, (tile_budget // (tn * itemsize)) // 128 * 128)
        tc = min(block_cols, _round_up(c, 128), max_tc)

    grid_rows = pl.cdiv(n, tn)
    grid_cols = pl.cdiv(c, tc)
    lane_path = (tc % 128 == 0)

    lab2 = labels.astype(jnp.int32).reshape(n, 1)

    kernel = functools.partial(
        _angular_loss_kernel, loss_type=loss_type, s=float(s), m=float(m),
        eps=float(eps), n_rows=n, n_cols=c, lane_path=lane_path)

    # Scoped VMEM budget, counting lane/sublane padding of every buffer and the
    # double buffering of the pipelined operands (plus headroom).
    x_block = tn * _round_up(tc, 128) * itemsize
    lab_block = tn * 128 * 4                 # (tn,1) int32, lane-padded to 128
    out_block = 8 * 128 * 4                  # (1,8,128) f32
    scratch = 2 * tn * 128 * 4               # two (tn,128) f32 accumulators
    vmem_need = 2 * (x_block + lab_block + out_block) + scratch
    vmem_limit = int(min(96 * 1024 * 1024,
                         max(32 * 1024 * 1024, int(vmem_need * 1.5))))

    partial_sums = pl.pallas_call(
        kernel,
        out_shape=jax.ShapeDtypeStruct((grid_rows, 8, 128), jnp.float32),
        grid_spec=pltpu.PrefetchScalarGridSpec(
            num_scalar_prefetch=0,
            grid=(grid_rows, grid_cols),
            in_specs=[
                pl.BlockSpec((tn, tc), lambda i, k: (i, k)),   # x tile
                pl.BlockSpec((tn, 1), lambda i, k: (i, 0)),    # labels tile
            ],
            out_specs=pl.BlockSpec((1, 8, 128), lambda i, k: (i, 0, 0)),
            scratch_shapes=[pltpu.VMEM((tn, 128), jnp.float32),   # target partials
                            pltpu.VMEM((tn, 128), jnp.float32)],  # excluded-exp partials
        ),
        compiler_params=pltpu.CompilerParams(
            dimension_semantics=("parallel", "arbitrary"),
            vmem_limit_bytes=vmem_limit),
    )(x, lab2)

    # Tiny final reduction in plain JAX (grid_rows scalars).
    return -jnp.sum(partial_sums[:, 0, 0]) / jnp.float32(n)


def _reference(x, labels, out_features, loss_type='arcface', eps=1e-5, s=None, m=None):
    """Pure-numpy replica of the PyTorch forward (for verification)."""
    loss_type = loss_type.lower()
    if loss_type == 'arcface':
        s = 64.0 if s is None else s; m = 0.5 if m is None else m
    if loss_type == 'sphereface':
        s = 64.0 if s is None else s; m = 1.35 if m is None else m
    if loss_type == 'cosface':
        s = 30.0 if s is None else s; m = 0.4 if m is None else m
    x = np.asarray(x, dtype=np.float64)
    labels = np.asarray(labels)
    tgt = x[np.arange(x.shape[0]), labels]
    if loss_type == 'cosface':
        numerator = s * (tgt - m)
    elif loss_type == 'arcface':
        numerator = s * np.cos(np.arccos(np.clip(tgt, -1.0 + eps, 1.0 - eps)) + m)
    else:
        numerator = s * np.cos(m * np.arccos(np.clip(tgt, -1.0 + eps, 1.0 - eps)))
    excl = np.stack([np.concatenate([x[i, :y], x[i, y + 1:]]) for i, y in enumerate(labels)], 0)
    denominator = np.exp(numerator) + np.sum(np.exp(s * excl), axis=1)
    L = numerator - np.log(denominator)
    return -np.mean(L)


if __name__ == "__main__":
    key = jax.random.PRNGKey(0)
    kx, kl, kx2, kl2, kx3, kl3 = jax.random.split(key, 6)

    # A) Small f32 case (single row tile, single class tile, non-lane-aligned C).
    N, C = 8, 16
    x = jax.random.uniform(kx, (N, C), dtype=jnp.float32, minval=-0.9, maxval=0.9)
    labels = jax.random.randint(kl, (N,), 0, C, dtype=jnp.int32)
    for lt in ("arcface", "cosface"):
        loss = jax.block_until_ready(
            angular_penalty_sm_loss(x, labels, out_features=C, loss_type=lt))
        ref = _reference(np.asarray(x), np.asarray(labels), C, loss_type=lt)
        assert np.allclose(float(loss), ref, rtol=1e-4, atol=1e-4), (lt, float(loss), ref)

    # B) Multi row / multi class tiles with ragged row AND class edges (no padding).
    N2, C2 = 21, 300
    x2 = jax.random.uniform(kx2, (N2, C2), dtype=jnp.float32, minval=-0.9, maxval=0.9)
    labels2 = jax.random.randint(kl2, (N2,), 0, C2, dtype=jnp.int32)
    loss2 = jax.block_until_ready(
        angular_penalty_sm_loss(x2, labels2, out_features=C2, loss_type='arcface',
                                block_rows=8, block_cols=128))
    ref2 = _reference(np.asarray(x2), np.asarray(labels2), C2, loss_type='arcface')
    assert np.allclose(float(loss2), ref2, rtol=1e-4, atol=1e-4), (float(loss2), ref2)

    # C) bf16 inputs, lane-aligned C, >=2 row tiles (dual-TC path).
    N3, C3 = 32, 256
    x3f = jax.random.uniform(kx3, (N3, C3), dtype=jnp.float32, minval=-0.9, maxval=0.9)
    x3 = x3f.astype(jnp.bfloat16)
    labels3 = jax.random.randint(kl3, (N3,), 0, C3, dtype=jnp.int32)
    loss3 = jax.block_until_ready(
        angular_penalty_sm_loss(x3, labels3, out_features=C3, loss_type='arcface'))
    ref3 = _reference(np.asarray(x3.astype(jnp.float32)), np.asarray(labels3), C3,
                      loss_type='arcface')
    assert np.allclose(float(loss3), ref3, rtol=1e-3, atol=1e-3), (float(loss3), ref3)

    print("KERNEL_OK")
</pallas_src>

<mosaic_0001>
module attributes {stable_mosaic.version = 11 : i64} {
  func.func @_angular_loss_kernel(%arg0: i32, %arg1: i32, %arg2: memref<8x16xf32, #tpu.memory_space<vmem>>, %arg3: memref<8x1xi32, #tpu.memory_space<vmem>>, %arg4: memref<1x8x128xf32, #tpu.memory_space<vmem>>, %arg5: memref<8x128xf32, #tpu.memory_space<vmem>>, %arg6: memref<8x128xf32, #tpu.memory_space<vmem>>) attributes {dimension_semantics = [#tpu.dimension_semantics<parallel>, #tpu.dimension_semantics<arbitrary>], iteration_bounds = array<i64: 1, 1>, scalar_prefetch = 0 : i64, scratch_operands = 2 : i64, tpu.core_type = #tpu.core_type<tc>, window_params = [{transform_indices = @transform_0, window_bounds = array<i64: 8, 16>}, {transform_indices = @transform_1, window_bounds = array<i64: 8, 1>}, {transform_indices = @transform_2, window_bounds = array<i64: 1, 8, 128>}]} {
    %c0 = arith.constant 0 : index
    %c0_0 = arith.constant 0 : index
    %0 = vector.load %arg2[%c0, %c0_0] : memref<8x16xf32, #tpu.memory_space<vmem>>, vector<8x16xf32>
    %c0_1 = arith.constant 0 : index
    %c0_2 = arith.constant 0 : index
    %1 = vector.load %arg3[%c0_1, %c0_2] : memref<8x1xi32, #tpu.memory_space<vmem>>, vector<8x1xi32>
    %2 = tpu.iota {dimensions = array<i32: 1>} : vector<8x16xi32>
    %c16_i32 = arith.constant 16 : i32
    %3 = arith.muli %arg1, %c16_i32 : i32
    %4 = vector.broadcast %3 : i32 to vector<8x1xi32>
    %5 = arith.subi %1, %4 : vector<8x1xi32>
    %6 = vector.broadcast %5 : vector<8x1xi32> to vector<8x16xi32>
    %7 = arith.cmpi eq, %2, %6 : vector<8x16xi32>
    %cst = arith.constant 6.400000e+01 : f32
    %8 = vector.broadcast %cst : f32 to vector<8x16xf32>
    %9 = arith.mulf %8, %0 : vector<8x16xf32>
    %10 = math.exp %9 : vector<8x16xf32>
    %c0_i32 = arith.constant 0 : i32
    %11 = arith.cmpi eq, %arg1, %c0_i32 : i32
    %12 = arith.extui %11 : i1 to i32
    %c0_i32_3 = arith.constant 0 : i32
    %13 = arith.cmpi ne, %12, %c0_i32_3 : i32
    scf.if %13 {
      %cst_4 = arith.constant 0.000000e+00 : f32
      %14 = vector.broadcast %cst_4 : f32 to vector<8x16xf32>
      %15 = arith.select %7, %0, %14 : vector<8x16xi1>, vector<8x16xf32>
      %cst_5 = arith.constant dense<0.000000e+00> : vector<8xf32>
      %16 = vector.multi_reduction <add>, %15, %cst_5 [1] : vector<8x16xf32> to vector<8xf32>
      %17 = vector.shape_cast %16 : vector<8xf32> to vector<8x1xf32>
      %cst_6 = arith.constant 0.000000e+00 : f32
      %18 = vector.broadcast %cst_6 : f32 to vector<8x16xf32>
      %19 = arith.select %7, %18, %10 : vector<8x16xi1>, vector<8x16xf32>
      %cst_7 = arith.constant dense<0.000000e+00> : vector<8xf32>
      %20 = vector.multi_reduction <add>, %19, %cst_7 [1] : vector<8x16xf32> to vector<8xf32>
      %21 = vector.shape_cast %20 : vector<8xf32> to vector<8x1xf32>
      %cst_8 = arith.constant -0.999989986 : f32
      %cst_9 = arith.constant 0.999989986 : f32
      %22 = vector.broadcast %cst_8 : f32 to vector<8x1xf32>
      %23 = arith.maximumf %22, %17 : vector<8x1xf32>
      %24 = vector.broadcast %cst_9 : f32 to vector<8x1xf32>
      %25 = arith.minimumf %24, %23 : vector<8x1xf32>
      %cst_10 = arith.constant 0.87758255 : f32
      %26 = vector.broadcast %cst_10 : f32 to vector<8x1xf32>
      %27 = arith.mulf %25, %26 : vector<8x1xf32>
      %28 = arith.mulf %25, %25 : vector<8x1xf32>
      %cst_11 = arith.constant 1.000000e+00 : f32
      %29 = vector.broadcast %cst_11 : f32 to vector<8x1xf32>
      %30 = arith.subf %29, %28 : vector<8x1xf32>
      %31 = math.sqrt %30 : vector<8x1xf32>
      %cst_12 = arith.constant 0.47942555 : f32
      %32 = vector.broadcast %cst_12 : f32 to vector<8x1xf32>
      %33 = arith.mulf %31, %32 : vector<8x1xf32>
      %34 = arith.subf %27, %33 : vector<8x1xf32>
      %cst_13 = arith.constant 6.400000e+01 : f32
      %35 = vector.broadcast %cst_13 : f32 to vector<8x1xf32>
      %36 = arith.mulf %35, %34 : vector<8x1xf32>
      %37 = math.exp %36 : vector<8x1xf32>
      %38 = arith.addf %37, %21 : vector<8x1xf32>
      %39 = math.log %38 : vector<8x1xf32>
      %40 = arith.subf %36, %39 : vector<8x1xf32>
      %cst_14 = arith.constant dense<0.000000e+00> : vector<1xf32>
      %41 = vector.multi_reduction <add>, %40, %cst_14 [0] : vector<8x1xf32> to vector<1xf32>
      %42 = vector.shape_cast %41 : vector<1xf32> to vector<1x1xf32>
      %43 = vector.shape_cast %42 : vector<1x1xf32> to vector<1x1x1xf32>
      %44 = vector.broadcast %43 : vector<1x1x1xf32> to vector<1x8x128xf32>
      %c0_15 = arith.constant 0 : index
      %c0_16 = arith.constant 0 : index
      %c0_17 = arith.constant 0 : index
      %45 = vector.load %arg4[%c0_15, %c0_16, %c0_17] : memref<1x8x128xf32, #tpu.memory_space<vmem>>, vector<1x8x128xf32>
      tpu.vector_store %arg4[%c0_15, %c0_16, %c0_17], %44 {strides = array<i32>} : memref<1x8x128xf32, #tpu.memory_space<vmem>>, vector<1x8x128xf32>,
    } else {
    }
    return
  }
  func.func @transform_0(%arg0: i32, %arg1: i32) -> (i32, i32) {
    %c0_i32 = arith.constant 0 : i32
    return %arg0, %arg1 : i32, i32
  }
  func.func @transform_1(%arg0: i32, %arg1: i32) -> (i32, i32) {
    %c0_i32 = arith.constant 0 : i32
    %c0_i32_0 = arith.constant 0 : i32
    return %arg0, %c0_i32 : i32, i32
  }
  func.func @transform_2(%arg0: i32, %arg1: i32) -> (i32, i32, i32) {
    %c0_i32 = arith.constant 0 : i32
    %c0_i32_0 = arith.constant 0 : i32
    %c0_i32_1 = arith.constant 0 : i32
    return %arg0, %c0_i32, %c0_i32_0 : i32, i32, i32
  }
}

</mosaic_0001>

<bundles_post_ra>
// kernel: tpu_custom_call.1
= control target key start
LH: loop header
LB: loop body
LE: loop exit
PB: predicated region body
PF: predicated region fallthrough
CT: control target
= control target key end

     0   :  { %s152_s0 = inlined_call_operand.vmem [shape: f32[8,16], index: 0, kind: input, shape index: {}]   ;;  %s153_s1 = inlined_call_operand.vmem [shape: s32[8,1], index: 1, kind: input, shape index: {}]   ;;  %s154_s2 = inlined_call_operand.hbm [shape: f32[1,8,128], index: 2, kind: output, shape index: {}]  }
   0x1   :  { %v13_v0 = vld [vmem:[%s153_s1] sm:$0xff] }
   0x2   :  { %7 = vsyncpa [#allocation5], 0  ;;  %v126_v1 = vmov 0   ;;  %v12_v2 = vld [vmem:[%s152_s0] sm:$0xff]  ;;  %v14_v5 = vlaneseq  ;;  %vm31_vm0 = vcmask 130048   ;;  %s127_s0 = smov [#allocation4]  }
   0x3   :  { %91 = vset.pattern.permute.xlu0 %v126_v1  ;;  %v23_v3 = vmul.f32 64.0, %v12_v2  ;;  %s77_s1 = sshll.u32 %s127_s0, 4  ;;  %s79_s15 = sshll.u32 %s154_s2, 4  ;;  %s78_s1 = int_to_ptr.vmem [resolvable:$true] %s77_s1  ;;  %s80_s15 = int_to_ptr.hbm [resolvable:$true] %s79_s15 }
   0x4   :  { %20 = vperm.xlu0 %91, %v13_v0   ;;  %v15_v6 = vand.u32 127, %v14_v5 }
   0x5   :  { %v24_v4 = vmul.f32 1.442695, %v23_v3 }
   0x7   :  { %92 = vpow2.f32 %v24_v4 }
   0xd   :  { %v93_v7 = vpop.eup %92 }
  0x76   :  { %v21_v8 = vpop.permute.xlu0 %20 }
  0x77   :  { %vm22_vm1 = vcmp.eq.s32.totalorder %v15_v6, %v21_v8 }
  0x78   :  { %v30_v9 = vsel %vm22_vm1, %v12_v2, 0.0  ;;  %v35_v10 = vsel %vm22_vm1, 0.0, %v93_v7 }
  0x79   :  { %v32_v11 = vsel %vm31_vm0, %v30_v9, 0.0  ;;  %v36_v12 = vsel %vm31_vm0, %v35_v10, 0.0 }
  0x7a   :  { %33 = vadd.xlane.f32.xlu0 %v32_v11  ;;  %37 = vadd.xlane.f32.xlu1 %v36_v12 }
  0xed   :  { %v34_v13 = vpop.xlane.xlu0 %33  ;;  %v38_v33 = vpop.xlane.xlu1 %37 }
  0xee   :  { %v88_v14 = vclamps-f32 %v34_v13, 0.99999 }
  0xf0   :  { %v42_v15 = vmul.f32 %v88_v14, %v88_v14  ;;  %v41_v27 = vmul.f32 0.87758255, %v88_v14 }
  0xf2   :  { %v43_v16 = vsub.f32 1.0, %v42_v15 }
  0xf4   :  { %94 = vrsqrt.f32 %v43_v16  ;;  %vm51_vm2 = vcmp.eq.f32.partialorder %v43_v16, inf  ;;  %v54_v24 = vand.u32 2147483648, %v43_v16  ;;  %vm53_vm3 = vcmp.eq.f32.partialorder %v43_v16, 0.0 }
  0xfa   :  { %v95_v17 = vpop.eup %94 }
  0xfb   :  { %v45_v18 = vmul.f32 %v95_v17, %v43_v16 }
  0xfd   :  { %v46_v19 = vmul.f32 %v95_v17, %v45_v18 }
  0xff   :  { %v47_v20 = vmul.f32 0.5, %v46_v19 }
 0x101   :  { %v48_v21 = vsub.f32 1.5, %v47_v20 }
 0x103   :  { %v49_v22 = vmul.f32 %v95_v17, %v48_v21 }
 0x105   :  { %v50_v23 = vmul.f32 %v49_v22, %v43_v16 }
 0x107   :  { %v52_v25 = vsel %vm51_vm2, %v43_v16, %v50_v23 }
 0x108   :  { %v55_v26 = vsel %vm53_vm3, %v54_v24, %v52_v25 }
 0x109   :  { %v56_v28 = vmul.f32 0.47942555, %v55_v26 }
 0x10b   :  { %v57_v29 = vsub.f32 %v41_v27, %v56_v28 }
 0x10d   :  { %v58_v30 = vmul.f32 64.0, %v57_v29 }
 0x10f   :  { %v59_v31 = vmul.f32 1.442695, %v58_v30 }
 0x111   :  { %96 = vpow2.f32 %v59_v31 }
 0x117   :  { %v97_v32 = vpop.eup %96 }
 0x118   :  { %v61_v34 = vadd.f32 %v97_v32, %v38_v33 }
 0x11a   :  { %98 = vlog2.f32 %v61_v34 }
 0x120   :  { %v99_v35 = vpop.eup %98 }
 0x121   :  { %v63_v36 = vmul.f32 0.6931472, %v99_v35 }
 0x123   :  { %v64_v37 = vsub.f32 %v58_v30, %v63_v36 }
 0x125   :  { %v65_v38 = vrot.slane %v64_v37, 4 }
 0x127   :  { %v66_v39 = vadd.f32 %v65_v38, %v64_v37 }
 0x129   :  { %v67_v40 = vrot.slane %v66_v39, 2 }
 0x12b   :  { %v68_v41 = vadd.f32 %v67_v40, %v66_v39 }
 0x12d   :  { %v69_v42 = vrot.slane %v68_v41, 1 }
 0x12f   :  { %v70_v43 = vadd.f32 %v69_v42, %v68_v41 }
 0x131   :  { %71 = vst [vmem:[#allocation4] sm:$0xff] %v70_v43 }
 0x132   :  { %82 = dma.vmem_to_hbm [thread:$0]  %s78_s1, 128, %s80_s15, [#allocation5]  }
 0x133   :  { %124 = dma.done.wait [#allocation5], 128  }
 0x134   :  { %125 = vsyncadd [#allocation5], 4294967168 }
 0x135   :  { %87 = vsyncpa [#allocation5], 1 }

</bundles_post_ra>
